<compile_context>
chip_gen: v5e
topology: v5e:2x2
jax: 0.10.0
libtpu: 0.0.40
codegen_flags: <defaults>
</compile_context>

<pallas_src>
import jax
import jax.numpy as jnp
from jax.experimental import pallas as pl
from jax.experimental.pallas import tpu as pltpu


def generate_filter(start, end, size):
    # Same semantics as the PyTorch helper: 1.0 where start < i+j <= end, else 0.0
    return [[0.0 if (i + j > end or i + j <= start) else 1.0 for j in range(size)]
            for i in range(size)]


def _filter_kernel(x_ref, filt_ref, o_ref):
    # x_ref:    (rb, S*S)  VMEM   lane-dense rows of the input
    # filt_ref: (1,  S*S)  VMEM   precomputed effective filter (already /ft_num)
    # o_ref:    (rb, S*S)  VMEM
    # Pure streaming broadcast-multiply: (1, L) broadcasts over the sublane axis.
    o_ref[...] = x_ref[...] * filt_ref[...]


def _default_target_block_bytes():
    """Per-generation tile-size target (per buffer)."""
    try:
        kind = jax.devices()[0].device_kind.lower()
    except Exception:
        return 2 * 1024 * 1024
    if "v7" in kind:
        return 6 * 1024 * 1024      # ~3.2 TB/s: amortize the ~0.35 us/step overhead
    if "v6" in kind:
        return 4 * 1024 * 1024
    return 2 * 1024 * 1024          # v5e & unknown: conservative


def _choose_row_block(rows, lanes, itemsize, target_block_bytes, min_steps=8):
    """Pick (rb, grid_len): rb respects dtype sublane packing, the grid has at
    least ~min_steps steps (for DMA overlap / megacore split) and is nudged to
    an even length when multi-step (v7x 2-TC split)."""
    packing = max(8, 32 // itemsize)            # 8 f32, 16 bf16, 32 int8/fp8
    bytes_per_row = lanes * itemsize
    rb_cap = max(packing, (target_block_bytes // bytes_per_row) // packing * packing)

    if rows <= packing:
        # Genuinely tiny: a single full-dim block is always legal.
        return rows, 1

    # Cap rb so the grid has >= min_steps steps (never the unpipelined grid=(1,)).
    rb = min(rb_cap, max(packing, (rows // min_steps) // packing * packing))
    grid_len = -(-rows // rb)

    # Prefer an even step count so both v7x TensorCores get equal work.
    while grid_len > 1 and grid_len % 2 == 1 and rb > packing:
        rb -= packing
        grid_len = -(-rows // rb)
    return rb, grid_len


def filter_forward(x, base, learnable, *, use_learnable=True, norm=False,
                   target_block_bytes=None, use_pallas=None,
                   small_input_bytes=1 << 20):
    """Filter module forward pass.  x: (N, C, S, S)."""
    N, C, S, S2 = x.shape
    assert S == S2, "expected square spatial dims"
    rows = N * C
    lanes = S * S
    itemsize = jnp.dtype(x.dtype).itemsize

    # ---- effective filter, computed once (tiny: S*S elements) -------------
    if use_learnable:
        filt = base + (2.0 * jax.nn.sigmoid(learnable) - 1.0)   # norm_sigma
    else:
        filt = base
    if norm:
        # jit-safe: stays on device, no blocking float() conversion.
        filt = filt / jnp.sum(base)
    # TODO(synk): for bf16 x, PyTorch promotes to f32 output; we keep x.dtype.
    filt = filt.astype(x.dtype)

    total_bytes = rows * lanes * itemsize
    if use_pallas is None:
        use_pallas = total_bytes >= small_input_bytes
    if not use_pallas:
        # Tiny input: fused XLA elementwise is strictly faster than any kernel
        # launch + pipeline prologue.
        return x * filt[None, None, :, :]

    # ---- lane-dense view of x ----------------------------------------------
    x2 = x.reshape(rows, lanes)
    filt2 = filt.reshape(1, lanes)

    # ---- row-block sizing ----------------------------------------------------
    if target_block_bytes is None:
        target_block_bytes = _default_target_block_bytes()
    rb, grid_len = _choose_row_block(rows, lanes, itemsize, target_block_bytes)

    # Explicit VMEM budget: in+out, each double-buffered, plus filter + slack.
    block_bytes = rb * lanes * itemsize
    vmem_limit = 4 * block_bytes + lanes * itemsize + (2 << 20)

    y2 = pl.pallas_call(
        _filter_kernel,
        out_shape=jax.ShapeDtypeStruct((rows, lanes), x.dtype),
        grid_spec=pltpu.PrefetchScalarGridSpec(
            num_scalar_prefetch=0,
            grid=(grid_len,),
            in_specs=[
                pl.BlockSpec((rb, lanes), lambda r: (r, 0)),
                pl.BlockSpec((1, lanes), lambda r: (0, 0)),   # constant block: no re-DMA
            ],
            out_specs=pl.BlockSpec((rb, lanes), lambda r: (r, 0)),
        ),
        compiler_params=pltpu.CompilerParams(
            dimension_semantics=("parallel",),    # shards rows across v7x TensorCores
            vmem_limit_bytes=int(vmem_limit),
        ),
    )(x2, filt2)

    return y2.reshape(N, C, S, S)


if __name__ == "__main__":
    # Module config: Filter(size=16, band_start=0, band_end=16, use_learnable=True)
    size = 16
    band_start, band_end = 0, size
    N, C = 2, 4

    key = jax.random.PRNGKey(0)
    k_x, k_learn, k_big = jax.random.split(key, 3)

    x = jax.random.normal(k_x, (N, C, size, size), dtype=jnp.float32)

    # base: fixed band-pass mask (requires_grad=False in PyTorch)
    base = jnp.asarray(generate_filter(band_start, band_end, size), dtype=jnp.float32)
    # learnable: normal_(0.0, 0.1) init (deterministic here via PRNGKey(0))
    learnable = 0.1 * jax.random.normal(k_learn, (size, size), dtype=jnp.float32)

    # Reference in plain JAX (same math as the PyTorch forward).
    filt_ref = base + (2.0 * jax.nn.sigmoid(learnable) - 1.0)

    # 1) Small example, force the Pallas kernel path (single-block grid).
    y = jax.block_until_ready(
        filter_forward(x, base, learnable, use_learnable=True, norm=False,
                       use_pallas=True))
    y_ref = x * filt_ref[None, None, :, :]
    assert jnp.allclose(y, y_ref, atol=1e-6, rtol=1e-6), "mismatch vs reference"

    # 2) norm=True branch through the kernel.
    y_n = jax.block_until_ready(
        filter_forward(x, base, learnable, use_learnable=True, norm=True,
                       use_pallas=True))
    y_n_ref = x * filt_ref[None, None, :, :] / jnp.sum(base)
    assert jnp.allclose(y_n, y_n_ref, atol=1e-6, rtol=1e-6), "norm mismatch vs reference"

    # 3) Tiny-input auto path (fused XLA multiply, no pallas_call).
    y_fused = jax.block_until_ready(
        filter_forward(x, base, learnable, use_learnable=True, norm=False))
    assert jnp.allclose(y_fused, y_ref, atol=1e-6, rtol=1e-6), "fused-path mismatch"

    # 4) Moderate input with a small forced tile -> exercises the multi-step,
    #    even-length, double-buffered pipeline (partial last block included).
    Nb, Cb = 9, 15            # rows = 135 (not a multiple of 8) -> masked tail block
    xb = jax.random.normal(k_big, (Nb, Cb, size, size), dtype=jnp.float32)
    yb = jax.block_until_ready(
        filter_forward(xb, base, learnable, use_learnable=True, norm=False,
                       use_pallas=True, target_block_bytes=16 * 1024))
    yb_ref = xb * filt_ref[None, None, :, :]
    assert jnp.allclose(yb, yb_ref, atol=1e-6, rtol=1e-6), "pipelined-path mismatch"

    print("KERNEL_OK")
</pallas_src>

<mosaic_0001>
module attributes {stable_mosaic.version = 11 : i64} {
  func.func @_filter_kernel(%arg0: i32, %arg1: memref<8x256xf32, #tpu.memory_space<vmem>>, %arg2: memref<1x256xf32, #tpu.memory_space<vmem>>, %arg3: memref<8x256xf32, #tpu.memory_space<vmem>>) attributes {dimension_semantics = [#tpu.dimension_semantics<parallel>], iteration_bounds = array<i64: 1>, scalar_prefetch = 0 : i64, scratch_operands = 0 : i64, tpu.core_type = #tpu.core_type<tc>, window_params = [{transform_indices = @transform_0, window_bounds = array<i64: 8, 256>}, {pipeline_mode = #tpu.pipeline_mode<synchronous>, transform_indices = @transform_1, window_bounds = array<i64: 1, 256>}, {transform_indices = @transform_2, window_bounds = array<i64: 8, 256>}]} {
    %c0 = arith.constant 0 : index
    %c0_0 = arith.constant 0 : index
    %0 = vector.load %arg1[%c0, %c0_0] : memref<8x256xf32, #tpu.memory_space<vmem>>, vector<8x256xf32>
    %c0_1 = arith.constant 0 : index
    %c0_2 = arith.constant 0 : index
    %1 = vector.load %arg2[%c0_1, %c0_2] : memref<1x256xf32, #tpu.memory_space<vmem>>, vector<1x256xf32>
    %2 = vector.broadcast %1 : vector<1x256xf32> to vector<8x256xf32>
    %3 = arith.mulf %0, %2 : vector<8x256xf32>
    %c0_3 = arith.constant 0 : index
    %c0_4 = arith.constant 0 : index
    %4 = vector.load %arg3[%c0_3, %c0_4] : memref<8x256xf32, #tpu.memory_space<vmem>>, vector<8x256xf32>
    tpu.vector_store %arg3[%c0_3, %c0_4], %3 {strides = array<i32>} : memref<8x256xf32, #tpu.memory_space<vmem>>, vector<8x256xf32>,
    return
  }
  func.func @transform_0(%arg0: i32) -> (i32, i32) {
    %c0_i32 = arith.constant 0 : i32
    %c0_i32_0 = arith.constant 0 : i32
    return %arg0, %c0_i32 : i32, i32
  }
  func.func @transform_1(%arg0: i32) -> (i32, i32) {
    %c0_i32 = arith.constant 0 : i32
    %c0_i32_0 = arith.constant 0 : i32
    %c0_i32_1 = arith.constant 0 : i32
    return %c0_i32, %c0_i32_0 : i32, i32
  }
  func.func @transform_2(%arg0: i32) -> (i32, i32) {
    %c0_i32 = arith.constant 0 : i32
    %c0_i32_0 = arith.constant 0 : i32
    return %arg0, %c0_i32 : i32, i32
  }
}

</mosaic_0001>

<bundles_post_ra>
// kernel: tpu_custom_call.1
= control target key start
LH: loop header
LB: loop body
LE: loop exit
PB: predicated region body
PF: predicated region fallthrough
CT: control target
= control target key end

     0   :  { %7 = vsyncpa [#allocation3], 0  ;;  %s178_s0 = inlined_call_operand.hbm [shape: f32[8,256], index: 0, kind: input, shape index: {}]   ;;  %s179_s1 = inlined_call_operand.hbm [shape: f32[1,256], index: 1, kind: input, shape index: {}]   ;;  %s180_s2 = inlined_call_operand.hbm [shape: f32[8,256], index: 2, kind: output, shape index: {}]  }
   0x1   :  { %8 = vsyncpa [#allocation6], 0 }
   0x2   :  { %9 = vsyncpa [#allocation4], 0  ;;  %s15_s11 = sshll.u32 %s178_s0, 4  ;;  %s151_s12 = smov [#allocation2]   ;;  %s16_s11 = int_to_ptr.hbm [resolvable:$true] %s15_s11 }
   0x3   :  { %s17_s13 = sshll.u32 %s151_s12, 4  ;;  %s26_s16 = sshll.u32 %s179_s1, 4  ;;  %s18_s13 = int_to_ptr.vmem [resolvable:$true] %s17_s13  ;;  %s27_s16 = int_to_ptr.hbm [resolvable:$true] %s26_s16 }
   0x4   :  { %20 = dma.hbm_to_vmem [thread:$0]  %s16_s11, 256, %s18_s13, [#allocation3]  }
   0x5   :  { %s152_s17 = smov [#allocation5]  }
   0x6   :  { %s28_s18 = sshll.u32 %s152_s17, 4  ;;  %s29_s18 = int_to_ptr.vmem [resolvable:$true] %s28_s18 }
   0x7   :  { %31 = dma.hbm_to_vmem [thread:$0]  %s27_s16, 32, %s29_s18, [#allocation6]  }
   0x8   :  { %145 = dma.done.wait [#allocation3], 256  }
   0x9   :  { %146 = vsyncadd [#allocation3], 4294967040 }
   0xa   :  { %147 = dma.done.wait [#allocation6], 32  }
   0xb   :  { %148 = vsyncadd [#allocation6], 4294967264  ;;  %v40_v0 = vld [vmem:[#allocation2] sm:$0xff]  ;;  %v42_v1 = vld [vmem:[#allocation5] sm:$0x3]  ;;  %s153_s0 = smov [#allocation7]  }
   0xc   :  { %v41_v2 = vld [vmem:[#allocation2 + $0x8] sm:$0xff]  ;;  %v44_v3 = vperm.slane %v42_v1, 0  ;;  %v45_v4 = vperm.slane %v42_v1, 1  ;;  %s57_s19 = sshll.u32 %s153_s0, 4  ;;  %s59_s1 = sshll.u32 %s180_s2, 4  ;;  %s58_s19 = int_to_ptr.vmem [resolvable:$true] %s57_s19  ;;  %s60_s1 = int_to_ptr.hbm [resolvable:$true] %s59_s1 }
   0xe   :  { %v48_v5 = vmul.f32 %v44_v3, %v40_v0  ;;  %v49_v6 = vmul.f32 %v45_v4, %v41_v2 }
  0x10   :  { %50 = vst [vmem:[#allocation7] sm:$0xff] %v48_v5 }
  0x11   :  { %51 = vst [vmem:[#allocation7 + $0x8] sm:$0xff] %v49_v6 }
  0x12   :  { %62 = dma.vmem_to_hbm [thread:$0]  %s58_s19, 256, %s60_s1, [#allocation4]  }
  0x13   :  { %149 = dma.done.wait [#allocation4], 256  }
  0x14   :  { %150 = vsyncadd [#allocation4], 4294967040 }
  0x15   :  { %67 = vsyncpa [#allocation3], 1 }
  0x16   :  { %68 = vsyncpa [#allocation6], 1 }
  0x17   :  { %69 = vsyncpa [#allocation4], 1 }

</bundles_post_ra>
